<compile_context>
chip_gen: v7x
topology: tpu7x:2x2x1
jax: 0.10.0
libtpu: 0.0.40
codegen_flags: <defaults>
</compile_context>

<pallas_src>
import functools

import jax
import jax.numpy as jnp
from jax.experimental import pallas as pl
from jax.experimental.pallas import tpu as pltpu

LANE = 128
ROW_ALIGN = 32          # sublane-tiling-safe for f32/bf16 p and int8/int32 gt
MAX_TILE_ROWS = 8192    # (8192,128) f32 = 4 MiB + int32 gt 4 MiB; x2 buffers ~16 MiB
MIN_KERNEL_ROWS = 32    # below this (<4096 elems) plain JAX beats a kernel launch


def _round_up(x, m):
    return ((x + m - 1) // m) * m


def _softplus_ce(p_f32, gt):
    """Per-element 2-class CE: logsumexp([1-p, p]) - [1-p, p][gt] == log(1 + exp(d))."""
    sign = jnp.where(gt > 0, 1.0, -1.0)          # 2*gt - 1
    d = (1.0 - 2.0 * p_f32) * sign               # d in [-1, 1] for valid inputs
    return jnp.log(1.0 + jnp.exp(d))


def _ce_partial_kernel(p_ref, gt_ref, out_ref, *, rows, tile_rows, needs_mask):
    p = p_ref[...].astype(jnp.float32)           # (tile_rows, 128), f32 in-register
    g = gt_ref[...]                              # (tile_rows, 128), native int dtype
    per_elem = _softplus_ce(p, g)

    def _store_unmasked():
        # Vreg-aligned regroup (tile_rows, 128) -> (tile_rows//8, 8, 128); the
        # leading-axis sum is pure vreg adds.  Output stays a lane-dense (8, 128).
        out_ref[0] = per_elem.reshape(-1, 8, LANE).sum(axis=0)

    if needs_mask:
        i = pl.program_id(0)
        last = pl.num_programs(0) - 1

        @pl.when(i != last)
        def _():
            _store_unmasked()

        @pl.when(i == last)
        def _():
            # Row mask only on the final (partial) block: global row index < rows.
            # int32 row math is fine for any N < 2**38 elements.
            row = jax.lax.broadcasted_iota(jnp.int32, per_elem.shape, 0)
            valid = (i * tile_rows + row) < rows
            masked = jnp.where(valid, per_elem, 0.0)   # select: OOB garbage never propagates
            out_ref[0] = masked.reshape(-1, 8, LANE).sum(axis=0)
    else:
        _store_unmasked()


def _kernel_call(p_body, gt_body, rows, tile_rows, needs_mask, num_blocks):
    kernel = functools.partial(
        _ce_partial_kernel, rows=rows, tile_rows=tile_rows, needs_mask=needs_mask)
    return pl.pallas_call(
        kernel,
        out_shape=jax.ShapeDtypeStruct((num_blocks, 8, LANE), jnp.float32),
        grid=(num_blocks,),
        in_specs=[
            pl.BlockSpec((tile_rows, LANE), lambda i: (i, 0)),
            pl.BlockSpec((tile_rows, LANE), lambda i: (i, 0)),
        ],
        out_specs=pl.BlockSpec((1, 8, LANE), lambda i: (i, 0, 0)),
        compiler_params=pltpu.CompilerParams(
            dimension_semantics=("parallel",),          # shardable across v7x's 2 TCs
            vmem_limit_bytes=32 * 1024 * 1024),         # big tiles on v5e's 16 MiB default
    )(p_body, gt_body)


@jax.jit
def cross_entropy_mask_loss(mask_pro, gt_mask):
    """JAX/Pallas equivalent of CrossEntropyMaskLoss.forward (mean CE over 2 classes)."""
    p = mask_pro.reshape(-1)
    if not jnp.issubdtype(p.dtype, jnp.floating):
        p = p.astype(jnp.float32)            # bf16/f32 inputs stream at native width
    gt = gt_mask.reshape(-1)
    if gt.dtype not in (jnp.int8, jnp.int32):
        gt = gt.astype(jnp.int32)            # common int32 path incurs NO cast pass

    n = p.shape[0]
    if n == 0:
        raise ValueError("cross_entropy_mask_loss: empty input")

    rows = n // LANE                         # 128-aligned lane-dense body
    n_body = rows * LANE

    total = jnp.zeros((), jnp.float32)

    if rows >= MIN_KERNEL_ROWS:
        # No full-stream jnp.pad: kernel runs on the aligned body; any <=127-elem
        # ragged tail is folded in below with plain JAX.
        p_body = (p if n_body == n else p[:n_body]).reshape(rows, LANE)
        gt_body = (gt if n_body == n else gt[:n_body]).reshape(rows, LANE)

        # Multiple of 32, capped by VMEM budget, and <= ~rows/2 so the parallel
        # grid has >=2 blocks (v7x two-TensorCore sharding).
        tile_rows = min(MAX_TILE_ROWS, _round_up(pl.cdiv(rows, 2), ROW_ALIGN))
        num_blocks = pl.cdiv(rows, tile_rows)
        needs_mask = (rows % tile_rows) != 0

        partials = _kernel_call(p_body, gt_body, rows, tile_rows, needs_mask, num_blocks)
        total = total + jnp.sum(partials)
        tail_start = n_body
    else:
        tail_start = 0                       # tiny input: everything in plain JAX

    if tail_start != n:
        p_t = p[tail_start:].astype(jnp.float32)
        g_t = gt[tail_start:]
        total = total + jnp.sum(_softplus_ce(p_t, g_t))

    # Mean reduction of nn.CrossEntropyLoss, using the true element count N.
    return total * (1.0 / n)


def _reference(mask_pro, gt_mask):
    """Pure-JAX reference of the PyTorch module, for a sanity check."""
    p = mask_pro.reshape(-1, 1).astype(jnp.float32)
    logits = jnp.concatenate([1.0 - p, p], axis=1)
    gt = gt_mask.reshape(-1).astype(jnp.int32)
    logz = jax.scipy.special.logsumexp(logits, axis=1)
    chosen = jnp.take_along_axis(logits, gt[:, None], axis=1)[:, 0]
    return jnp.mean(logz - chosen)


if __name__ == "__main__":
    key = jax.random.PRNGKey(0)
    k1, k2, k3, k4 = jax.random.split(key, 4)

    # Main case: (B, 1, H, W) probability map. N = 8192 -> 64 rows -> two parallel
    # 32-row blocks, unmasked fast path everywhere.
    shape = (2, 1, 64, 64)
    mask_pro = jax.nn.sigmoid(jax.random.normal(k1, shape, dtype=jnp.float32))
    gt_mask = jax.random.bernoulli(k2, p=0.5, shape=shape).astype(jnp.int32)

    loss = cross_entropy_mask_loss(mask_pro, gt_mask)
    jax.block_until_ready(loss)
    ref = _reference(mask_pro, gt_mask)
    assert jnp.allclose(loss, ref, atol=1e-5, rtol=1e-5), (loss, ref)

    # Ragged case: N = 6300 -> 49-row body (partial, masked last block) + 28-elem JAX tail.
    shape2 = (1, 1, 70, 90)
    mask_pro2 = jax.nn.sigmoid(jax.random.normal(k3, shape2, dtype=jnp.float32))
    gt_mask2 = jax.random.bernoulli(k4, p=0.5, shape=shape2).astype(jnp.int32)

    loss2 = cross_entropy_mask_loss(mask_pro2, gt_mask2)
    jax.block_until_ready(loss2)
    ref2 = _reference(mask_pro2, gt_mask2)
    assert jnp.allclose(loss2, ref2, atol=1e-5, rtol=1e-5), (loss2, ref2)

    print("KERNEL_OK")
</pallas_src>

<mosaic_0001>
module attributes {stable_mosaic.version = 11 : i64} {
  func.func @_ce_partial_kernel(%arg0: i32, %arg1: memref<32x128xf32, #tpu.memory_space<vmem>>, %arg2: memref<32x128xi32, #tpu.memory_space<vmem>>, %arg3: memref<1x8x128xf32, #tpu.memory_space<vmem>>) attributes {dimension_semantics = [#tpu.dimension_semantics<parallel>], iteration_bounds = array<i64: 2>, scalar_prefetch = 0 : i64, scratch_operands = 0 : i64, tpu.core_type = #tpu.core_type<tc>, window_params = [{transform_indices = @transform_0, window_bounds = array<i64: 32, 128>}, {transform_indices = @transform_1, window_bounds = array<i64: 32, 128>}, {transform_indices = @transform_2, window_bounds = array<i64: 1, 8, 128>}]} {
    %c0 = arith.constant 0 : index
    %c0_0 = arith.constant 0 : index
    %0 = vector.load %arg1[%c0, %c0_0] : memref<32x128xf32, #tpu.memory_space<vmem>>, vector<32x128xf32>
    %c0_1 = arith.constant 0 : index
    %c0_2 = arith.constant 0 : index
    %1 = vector.load %arg2[%c0_1, %c0_2] : memref<32x128xi32, #tpu.memory_space<vmem>>, vector<32x128xi32>
    %c0_i32 = arith.constant 0 : i32
    %2 = vector.broadcast %c0_i32 : i32 to vector<32x128xi32>
    %3 = arith.cmpi sgt, %1, %2 : vector<32x128xi32>
    %cst = arith.constant 1.000000e+00 : f32
    %cst_3 = arith.constant -1.000000e+00 : f32
    %4 = vector.broadcast %cst : f32 to vector<32x128xf32>
    %5 = vector.broadcast %cst_3 : f32 to vector<32x128xf32>
    %6 = arith.select %3, %4, %5 : vector<32x128xi1>, vector<32x128xf32>
    %cst_4 = arith.constant 2.000000e+00 : f32
    %7 = vector.broadcast %cst_4 : f32 to vector<32x128xf32>
    %8 = arith.mulf %7, %0 : vector<32x128xf32>
    %cst_5 = arith.constant 1.000000e+00 : f32
    %9 = vector.broadcast %cst_5 : f32 to vector<32x128xf32>
    %10 = arith.subf %9, %8 : vector<32x128xf32>
    %11 = arith.mulf %10, %6 : vector<32x128xf32>
    %12 = math.exp %11 : vector<32x128xf32>
    %cst_6 = arith.constant 1.000000e+00 : f32
    %13 = vector.broadcast %cst_6 : f32 to vector<32x128xf32>
    %14 = arith.addf %13, %12 : vector<32x128xf32>
    %15 = math.log %14 : vector<32x128xf32>
    %16 = vector.shape_cast %15 : vector<32x128xf32> to vector<4x8x128xf32>
    %cst_7 = arith.constant dense<0.000000e+00> : vector<8x128xf32>
    %17 = vector.multi_reduction <add>, %16, %cst_7 [0] : vector<4x8x128xf32> to vector<8x128xf32>
    %c0_8 = arith.constant 0 : index
    %c0_9 = arith.constant 0 : index
    %c0_10 = arith.constant 0 : index
    %18 = vector.load %arg3[%c0_8, %c0_9, %c0_10] : memref<1x8x128xf32, #tpu.memory_space<vmem>>, vector<1x8x128xf32>
    %19 = vector.shape_cast %18 : vector<1x8x128xf32> to vector<8x128xf32>
    %20 = vector.shape_cast %17 : vector<8x128xf32> to vector<1x8x128xf32>
    tpu.vector_store %arg3[%c0_8, %c0_9, %c0_10], %20 {strides = array<i32>} : memref<1x8x128xf32, #tpu.memory_space<vmem>>, vector<1x8x128xf32>,
    return
  }
  func.func @transform_0(%arg0: i32) -> (i32, i32) {
    %c0_i32 = arith.constant 0 : i32
    %c0_i32_0 = arith.constant 0 : i32
    return %arg0, %c0_i32 : i32, i32
  }
  func.func @transform_1(%arg0: i32) -> (i32, i32) {
    %c0_i32 = arith.constant 0 : i32
    %c0_i32_0 = arith.constant 0 : i32
    return %arg0, %c0_i32 : i32, i32
  }
  func.func @transform_2(%arg0: i32) -> (i32, i32, i32) {
    %c0_i32 = arith.constant 0 : i32
    %c0_i32_0 = arith.constant 0 : i32
    %c0_i32_1 = arith.constant 0 : i32
    return %arg0, %c0_i32, %c0_i32_0 : i32, i32, i32
  }
}

</mosaic_0001>

<bundles_post_ra>
// kernel: cross_entropy_mask_loss.1
= control target key start
LH: loop header
LB: loop body
LE: loop exit
PB: predicated region body
PF: predicated region fallthrough
CT: control target
= control target key end

     0   :  { %s344_s9 = smov 0   ;;  %s369_s0 = inlined_call_operand.vmem [shape: f32[64,128], index: 0, kind: input, shape index: {}]   ;;  %s370_s1 = inlined_call_operand.vmem [shape: s32[64,128], index: 1, kind: input, shape index: {}]   ;;  %s371_s2 = inlined_call_operand.vmem [shape: f32[2,8,128], index: 2, kind: output, shape index: {}]  }
   0x1 LB: > { %s350_s10 = sadd.s32 4294967295, %s326_s9   ;;  %p287_p0 = scmp.ge.s32.totalorder %s326_s9, 1  ;;  %s326_s9 = sphi %s344_s9, %s12_s9  }
   0x2   : > { %p124_p1 = scmp.lt.s32.totalorder %s326_s9, 3 }
   0x4   : > { %p125_p2 = pnand %p287_p0, %p124_p1 }
   0x5   : > { %s288_s11 = sshll.u32 (!%p125_p2), %s350_s10, 2  ;;  %v328_v12 = vmov (!%p125_p2), -1.0   ;;  %p162_p4 = scmp.lt.s32.totalorder (!%p125_p2), %s350_s10, 1 }
   0x6   : > { %128 = sbr.rel (%p125_p2) target bundleno = 60 (0x3c), region = 28  ;;  %p151_p3 = scmp.lt.s32.totalorder (!%p125_p2), %s288_s11, 7 }
   0xd   : > { %s373_s11 = smov (!%p151_p3, %s288_s11), 7  ;;  %s375_s10 = smov (!%p162_p4, %s350_s10), 1 }
   0xe   : > { %s289_s12 = sshll.u32 %s373_s11, 3  ;;  %s292_s19 = sshll.u32 %s375_s10, 3 }
   0xf   : > { %s154_s15 = scalar_lea.vmem %s369_s0, %s289_s12  ;;  %s160_s18 = scalar_lea.vmem %s370_s1, %s289_s12 }
  0x10   : > { %v166_v0 = vld [vmem:[%s154_s15] sm:$0xff]  ;;  %v167_v1 = vld [vmem:[%s154_s15 + $0x8] sm:$0xff]  ;;  %v168_v2 = vld [vmem:[%s154_s15 + $0x10] sm:$0xff]  ;;  %s165_s22 = scalar_lea.vmem %s371_s2, %s292_s19 }
  0x11   : > { %v169_v3 = vld [vmem:[%s154_s15 + $0x18] sm:$0xff]  ;;  %v170_v4 = vld [vmem:[%s160_s18] sm:$0xff]  ;;  %v171_v5 = vld [vmem:[%s160_s18 + $0x8] sm:$0xff]  ;;  %v182_v6 = vmul.f32 2.0, %v166_v0  ;;  %v183_v7 = vmul.f32 2.0, %v167_v1  ;;  %v184_v8 = vmul.f32 2.0, %v168_v2 }
  0x12   : > { %v172_v9 = vld [vmem:[%s160_s18 + $0x10] sm:$0xff]  ;;  %v173_v10 = vld [vmem:[%s160_s18 + $0x18] sm:$0xff]  ;;  %vm174_vm0 = vcmp.gt.s32.totalorder %v170_v4, 0  ;;  %vm175_vm1 = vcmp.gt.s32.totalorder %v171_v5, 0  ;;  %v185_v11 = vmul.f32 2.0, %v169_v3 }
  0x13   : > { %vm176_vm2 = vcmp.gt.s32.totalorder %v172_v9, 0  ;;  %vm177_vm3 = vcmp.gt.s32.totalorder %v173_v10, 0  ;;  %v178_v13 = vsel %vm174_vm0, 1.0, %v328_v12  ;;  %v179_v14 = vsel %vm175_vm1, 1.0, %v328_v12 }
  0x14   : > { %v180_v15 = vsel %vm176_vm2, 1.0, %v328_v12  ;;  %v181_v16 = vsel %vm177_vm3, 1.0, %v328_v12  ;;  %v186_v17 = vsub.f32 1.0, %v182_v6  ;;  %v187_v18 = vsub.f32 1.0, %v183_v7 }
  0x15   : > { %v188_v19 = vsub.f32 1.0, %v184_v8  ;;  %v189_v20 = vsub.f32 1.0, %v185_v11 }
  0x16   : > { %v190_v21 = vmul.f32 %v186_v17, %v178_v13  ;;  %v191_v22 = vmul.f32 %v187_v18, %v179_v14 }
  0x17   : > { %v192_v23 = vmul.f32 %v188_v19, %v180_v15  ;;  %v193_v24 = vmul.f32 %v189_v20, %v181_v16 }
  0x18   : > { %v194_v25 = vmul.f32 1.442695, %v190_v21  ;;  %v196_v26 = vmul.f32 1.442695, %v191_v22 }
  0x19   : > { %v198_v27 = vmul.f32 1.442695, %v192_v23  ;;  %v200_v28 = vmul.f32 1.442695, %v193_v24 }
  0x1a   : > { %304 = vpow2.f32 %v194_v25 }
  0x1b   : > { %306 = vpow2.f32 %v196_v26 }
  0x1c   : > { %308 = vpow2.f32 %v198_v27 }
  0x1d   : > { %310 = vpow2.f32 %v200_v28 }
  0x24   : > { %v305_v29 = vpop.eup %304 }
  0x25   : > { %v307_v30 = vpop.eup %306  ;;  %v202_v31 = vadd.f32 1.0, %v305_v29 }
  0x26   : > { %v309_v32 = vpop.eup %308  ;;  %v203_v33 = vadd.f32 1.0, %v307_v30 }
  0x27   : > { %v311_v34 = vpop.eup %310  ;;  %v204_v35 = vadd.f32 1.0, %v309_v32  ;;  %312 = vlog2.f32 %v202_v31 }
  0x28   : > { %v205_v36 = vadd.f32 1.0, %v311_v34  ;;  %314 = vlog2.f32 %v203_v33 }
  0x29   : > { %316 = vlog2.f32 %v204_v35 }
  0x2a   : > { %318 = vlog2.f32 %v205_v36 }
  0x31   : > { %v313_v37 = vpop.eup %312 }
  0x32   : > { %v315_v38 = vpop.eup %314  ;;  %v207_v39 = vmul.f32 0.6931472, %v313_v37 }
  0x33   : > { %v317_v40 = vpop.eup %316  ;;  %v209_v41 = vmul.f32 0.6931472, %v315_v38 }
  0x34   : > { %v319_v42 = vpop.eup %318  ;;  %v211_v43 = vmul.f32 0.6931472, %v317_v40 }
  0x35   : > { %v213_v44 = vmul.f32 0.6931472, %v319_v42  ;;  %v214_v45 = vadd.f32 %v209_v41, %v207_v39 }
  0x37   : > { %v215_v46 = vadd.f32 %v214_v45, %v211_v43 }
  0x39   : > { %v216_v47 = vadd.f32 %v215_v46, %v213_v44 }
  0x3b   : > { %217 = vst [vmem:[%s165_s22] sm:$0xff] %v216_v47 }
  0x3c PF: > { %s12_s9 = sadd.s32 1, %s326_s9  }
  0x3d   : > { %p9_p5 = scmp.ge.s32.totalorder %s12_s9, 4  }
  0x3f   :  { %11 = sbr.rel (!%p9_p5) target bundleno = 1 (0x1), region = 61 }

</bundles_post_ra>
